<compile_context>
chip_gen: v5e
topology: v5e:2x2
jax: 0.10.0
libtpu: 0.0.40
codegen_flags: <defaults>
</compile_context>

<pallas_src>
import numpy as np
import jax
import jax.numpy as jnp
from jax.experimental import pallas as pl
from jax.experimental.pallas import tpu as pltpu


# ----------------------------------------------------------------------------
# Skeleton topology helpers.
# TODO(synk): create_pooling_list / find_neighbor / SkeletonConv / SkeletonPool
# come from the deep-motion-editing skeleton library (not provided); the
# deterministic, topologically-consistent equivalents below reproduce their
# shape/masking semantics (masked temporal conv, mean edge pooling).
# ----------------------------------------------------------------------------
def _tree_distance(parents):
    n = len(parents)
    adj = [[] for _ in range(n)]
    for c, p in enumerate(parents):
        if p >= 0:
            adj[c].append(p)
            adj[p].append(c)
    dist = np.full((n, n), n + 1, dtype=np.int32)
    for s in range(n):
        dist[s, s] = 0
        frontier = [s]
        while frontier:
            nxt = []
            for u in frontier:
                for v in adj[u]:
                    if dist[s, v] > dist[s, u] + 1:
                        dist[s, v] = dist[s, u] + 1
                        nxt.append(v)
            frontier = nxt
    return dist


def find_neighbor(parents, d, add_displacement=False):
    dist = _tree_distance(parents)
    n = len(parents)
    neighbor_list = [[j for j in range(n) if dist[i, j] <= d] for i in range(n)]
    return neighbor_list, None


def create_pooling_list(parents, add_displacement=False):
    n = len(parents)
    pooling_list = []
    i = 0
    while i < n:
        grp = [i] if i + 1 >= n else [i, i + 1]
        pooling_list.append(grp)
        i += len(grp)
    group_of = {}
    for g, grp in enumerate(pooling_list):
        for j in grp:
            group_of[j] = g
    new_parents = []
    for grp in pooling_list:
        p = parents[grp[0]]
        new_parents.append(-1 if p < 0 else group_of[p])
    return pooling_list, new_parents


def conv_mask(neighbor_list, in_cpj, out_cpj):
    J = len(neighbor_list)
    m = np.zeros((J * out_cpj, J * in_cpj), dtype=np.float32)
    for i, nbrs in enumerate(neighbor_list):
        for j in nbrs:
            m[i * out_cpj:(i + 1) * out_cpj, j * in_cpj:(j + 1) * in_cpj] = 1.0
    return m


def pool_matrix(pooling_list, channels_per_edge, old_joints):
    new_joints = len(pooling_list)
    P = np.zeros((new_joints * channels_per_edge, old_joints * channels_per_edge),
                 dtype=np.float32)
    for g, grp in enumerate(pooling_list):
        w = 1.0 / len(grp)
        for j in grp:
            for c in range(channels_per_edge):
                P[g * channels_per_edge + c, j * channels_per_edge + c] = w
    return P


# ----------------------------------------------------------------------------
# Host-side folding: conv (masked, strided, padded) + mean-pool + bias -> one
# dense matrix on the flattened (C*T) feature axis.  Valid because all pieces
# are linear and LeakyReLU is applied after pooling (conv -> pool -> act).
# ----------------------------------------------------------------------------
def fold_conv_pool_layer(w, b, P, T_in, K, stride, pad):
    """w: (C_out, C_in, K) masked conv weight; b: (C_out,); P: (C_pool, C_out).

    Returns A (C_pool*T_out, C_in*T_in), b_flat (C_pool*T_out,), T_out with
        y[cp*T_out + t] = sum_{ci,s} A[cp*T_out+t, ci*T_in+s] * x[ci*T_in+s] + b
    Feature flattening uses index c*T + t, matching torch.flatten(start_dim=1).
    """
    C_out, C_in, _ = w.shape
    C_pool = P.shape[0]
    T_out = (T_in + 2 * pad - K) // stride + 1
    Wp = np.einsum('pc,cik->pik', P, w)          # pooling folded into conv weight
    bp = P @ b                                   # pooling folded into bias
    A4 = np.zeros((C_pool, T_out, C_in, T_in), np.float32)
    for t in range(T_out):
        for k in range(K):
            s = t * stride + k - pad
            if 0 <= s < T_in:
                A4[:, t, :, s] += Wp[:, :, k]
    A = A4.reshape(C_pool * T_out, C_in * T_in)
    b_flat = np.repeat(bp, T_out)
    return A, b_flat, T_out


def _round_up(x, m):
    return ((x + m - 1) // m) * m


# ----------------------------------------------------------------------------
# Pallas kernel: the entire Encoder forward, fused. Grid tiles the batch only;
# folded weights use constant index_maps so they stay resident in VMEM.
# ----------------------------------------------------------------------------
def fused_encoder_kernel(x_ref, a0_ref, b0_ref, a1_ref, b1_ref, a2_ref, b2_ref,
                         wh_ref, bh_ref, out_ref):
    """x_ref : (TB, F0)        bf16  flattened input activations (batch tile)
       a*_ref: (F_in, F_out)   bf16  folded conv+pool layer matrices
       b*_ref: (1, F_out)      f32   folded biases
       wh_ref: (F3, OUT_PAD)   bf16  merged [f_mu; f_logvar; zero-pad] weights
       bh_ref: (1, OUT_PAD)    f32   merged head bias (zero-padded)
       out_ref:(TB, OUT_PAD)   f32   [mu | logvar | pad]
    """
    def layer(h, a_ref, b_ref):
        y = jnp.dot(h, a_ref[...], preferred_element_type=jnp.float32)  # MXU f32 acc
        y = y + b_ref[...]                                               # f32 epilogue
        y = jnp.maximum(y, 0.2 * y)                                      # LeakyReLU(0.2)
        return y.astype(jnp.bfloat16)                                    # bf16 MXU input

    h = x_ref[...]
    h = layer(h, a0_ref, b0_ref)
    h = layer(h, a1_ref, b1_ref)
    h = layer(h, a2_ref, b2_ref)
    out = jnp.dot(h, wh_ref[...], preferred_element_type=jnp.float32) + bh_ref[...]
    out_ref[...] = out.astype(out_ref.dtype)


def fused_encoder_forward(x_flat, folded):
    """x_flat: (B, F0) bf16; folded: (a0,b0,a1,b1,a2,b2,wh,bh). Returns (B, OUT_PAD) f32."""
    a0, b0, a1, b1, a2, b2, wh, bh = folded
    B, F0 = x_flat.shape
    out_cols = wh.shape[1]

    # Batch tile: multiple of 8 sublanes, capped so weights + 2x double-buffered
    # activations stay comfortably inside VMEM.
    TB = min(256, _round_up(max(B, 1), 8))
    B_pad = _round_up(B, TB)
    if B_pad != B:
        x_flat = jnp.pad(x_flat, ((0, B_pad - B), (0, 0)))

    weight_specs = [pl.BlockSpec(w.shape, lambda i: (0, 0))
                    for w in (a0, b0, a1, b1, a2, b2, wh, bh)]

    out = pl.pallas_call(
        fused_encoder_kernel,
        out_shape=jax.ShapeDtypeStruct((B_pad, out_cols), jnp.float32),
        grid_spec=pltpu.PrefetchScalarGridSpec(
            num_scalar_prefetch=0,
            grid=(B_pad // TB,),
            in_specs=[pl.BlockSpec((TB, F0), lambda i: (i, 0))] + weight_specs,
            out_specs=pl.BlockSpec((TB, out_cols), lambda i: (i, 0)),
        ),
        compiler_params=pltpu.CompilerParams(
            dimension_semantics=("parallel",)),
    )(x_flat, a0, b0, a1, b1, a2, b2, wh, bh)
    return out[:B]


# ----------------------------------------------------------------------------
# Encoder (parameters built deterministically; forward = one Pallas kernel)
# ----------------------------------------------------------------------------
class PallasEncoder:
    OUT_PAD = 128   # lane-dense head output width (>= 2*latent_dim), unmasked vst

    def __init__(self, param, parents, key):
        self.K = param['kernel_size_temporal_dim']
        self.pad = (self.K - 1) // 2
        self.stride = param['stride_encoder_conv']
        self.latent_dim = param['latent_dim']
        number_layers = 3
        assert 2 * self.latent_dim <= self.OUT_PAD

        self.parents = [parents]
        self.pooling_lists = []
        layer_parents = parents
        for _ in range(number_layers):
            pooling_list, layer_parents = create_pooling_list(layer_parents,
                                                              add_displacement=False)
            self.pooling_lists.append(pooling_list)
            self.parents.append(layer_parents)

        default_channels_per_joints = 8
        factor = param['channel_factor']
        self.channel_size = ([default_channels_per_joints]
                             + [default_channels_per_joints * factor ** i
                                for i in range(1, number_layers + 1)])

        keys = jax.random.split(key, 2 * number_layers + 3)
        self.layers_raw = []                      # (w_masked, bias, P) as numpy
        for l in range(number_layers):
            neighbor_list, _ = find_neighbor(self.parents[l],
                                             param['neighbor_distance'],
                                             add_displacement=False)
            J = len(neighbor_list)
            in_cpj, out_cpj = self.channel_size[l], self.channel_size[l + 1]
            C_in, C_out = J * in_cpj, J * out_cpj
            mask = conv_mask(neighbor_list, in_cpj, out_cpj)
            w = (np.asarray(jax.random.normal(keys[2 * l], (C_out, C_in, self.K),
                                              jnp.float32))
                 * (1.0 / np.sqrt(C_in * self.K)))
            w = w * mask[:, :, None]              # SkeletonConv masking
            b = np.asarray(jax.random.normal(keys[2 * l + 1], (C_out,),
                                             jnp.float32)) * 0.01
            P = pool_matrix(self.pooling_lists[l], out_cpj, J)
            self.layers_raw.append((w, b, P))

        primal = self.channel_size[-1] * len(self.parents[-1])
        L = self.latent_dim
        wmu = (np.asarray(jax.random.normal(keys[-3], (L, primal), jnp.float32))
               * (1.0 / np.sqrt(primal)))
        bmu = np.asarray(jax.random.normal(keys[-2], (L,), jnp.float32)) * 0.01
        wlv = np.zeros((L, primal), np.float32)   # f_logvar.weight <- zeros
        blv = np.asarray(jax.random.normal(keys[-1], (L,), jnp.float32)) * 0.01
        self._primal = primal
        # Merged heads, zero-padded to OUT_PAD lanes for an unmasked final store.
        wh = np.zeros((primal, self.OUT_PAD), np.float32)
        wh[:, :L] = wmu.T
        wh[:, L:2 * L] = wlv.T
        bh = np.zeros((1, self.OUT_PAD), np.float32)
        bh[0, :L] = bmu
        bh[0, L:2 * L] = blv
        self._wh = wh
        self._bh = bh
        self._folded_cache = {}

    def _folded(self, T):
        """Fold every layer (and the merged heads) for temporal length T; cached."""
        if T in self._folded_cache:
            return self._folded_cache[T]
        mats = []
        T_in = T
        for (w, b, P) in self.layers_raw:
            A, b_flat, T_out = fold_conv_pool_layer(w, b, P, T_in, self.K,
                                                    self.stride, self.pad)
            mats.append(jnp.asarray(A.T, jnp.bfloat16))              # (F_in, F_out)
            mats.append(jnp.asarray(b_flat.reshape(1, -1), jnp.float32))
            T_in = T_out
        final_features = self.layers_raw[-1][2].shape[0] * T_in
        assert final_features == self._primal, (
            f"flattened feature size {final_features} != Linear input {self._primal}; "
            f"temporal length {T} is incompatible with 3 stride-{self.stride} layers")
        mats.append(jnp.asarray(self._wh, jnp.bfloat16))
        mats.append(jnp.asarray(self._bh, jnp.float32))
        folded = tuple(mats)
        self._folded_cache[T] = folded
        return folded

    def __call__(self, x):
        # x: (B, C, T) float32, PyTorch NCT layout
        B, C0, T = x.shape
        folded = self._folded(T)
        # flatten(start_dim=1) ordering: feature index = c*T + t (matches PyTorch)
        x_flat = x.reshape(B, C0 * T).astype(jnp.bfloat16)
        out = fused_encoder_forward(x_flat, folded)          # (B, OUT_PAD) f32
        L = self.latent_dim
        return out[:, :L], out[:, L:2 * L]


if __name__ == "__main__":
    param = dict(kernel_size_temporal_dim=3,
                 stride_encoder_conv=2,
                 channel_factor=2,
                 neighbor_distance=1,
                 latent_dim=16)
    parents = [-1, 0, 1, 2, 3, 4, 5, 6]                 # 8-joint chain skeleton

    key = jax.random.PRNGKey(0)
    k_param, k_x = jax.random.split(key)
    enc = PallasEncoder(param, parents, k_param)

    B, T = 2, 8
    C0 = 8 * len(parents)                                # 8 channels per joint
    x = jax.random.normal(k_x, (B, C0, T), jnp.float32)  # (B, C, T) = (2, 64, 8)

    mu, logvar = enc(x)
    mu, logvar = jax.block_until_ready((mu, logvar))
    assert mu.shape == (B, param['latent_dim'])
    assert logvar.shape == (B, param['latent_dim'])
    assert bool(jnp.all(jnp.isfinite(mu))) and bool(jnp.all(jnp.isfinite(logvar)))
    print("KERNEL_OK")
</pallas_src>

<mosaic_0001>
module attributes {stable_mosaic.version = 11 : i64} {
  func.func @fused_encoder_kernel(%arg0: i32, %arg1: memref<8x512xbf16, #tpu.memory_space<vmem>>, %arg2: memref<512x256xbf16, #tpu.memory_space<vmem>>, %arg3: memref<1x256xf32, #tpu.memory_space<vmem>>, %arg4: memref<256x128xbf16, #tpu.memory_space<vmem>>, %arg5: memref<1x128xf32, #tpu.memory_space<vmem>>, %arg6: memref<128x64xbf16, #tpu.memory_space<vmem>>, %arg7: memref<1x64xf32, #tpu.memory_space<vmem>>, %arg8: memref<64x128xbf16, #tpu.memory_space<vmem>>, %arg9: memref<1x128xf32, #tpu.memory_space<vmem>>, %arg10: memref<8x128xf32, #tpu.memory_space<vmem>>) attributes {dimension_semantics = [#tpu.dimension_semantics<parallel>], iteration_bounds = array<i64: 1>, scalar_prefetch = 0 : i64, scratch_operands = 0 : i64, tpu.core_type = #tpu.core_type<tc>, window_params = [{transform_indices = @transform_0, window_bounds = array<i64: 8, 512>}, {pipeline_mode = #tpu.pipeline_mode<synchronous>, transform_indices = @transform_1, window_bounds = array<i64: 512, 256>}, {pipeline_mode = #tpu.pipeline_mode<synchronous>, transform_indices = @transform_2, window_bounds = array<i64: 1, 256>}, {pipeline_mode = #tpu.pipeline_mode<synchronous>, transform_indices = @transform_3, window_bounds = array<i64: 256, 128>}, {pipeline_mode = #tpu.pipeline_mode<synchronous>, transform_indices = @transform_4, window_bounds = array<i64: 1, 128>}, {pipeline_mode = #tpu.pipeline_mode<synchronous>, transform_indices = @transform_5, window_bounds = array<i64: 128, 64>}, {pipeline_mode = #tpu.pipeline_mode<synchronous>, transform_indices = @transform_6, window_bounds = array<i64: 1, 64>}, {pipeline_mode = #tpu.pipeline_mode<synchronous>, transform_indices = @transform_7, window_bounds = array<i64: 64, 128>}, {pipeline_mode = #tpu.pipeline_mode<synchronous>, transform_indices = @transform_8, window_bounds = array<i64: 1, 128>}, {transform_indices = @transform_9, window_bounds = array<i64: 8, 128>}]} {
    %c0 = arith.constant 0 : index
    %c0_0 = arith.constant 0 : index
    %0 = vector.load %arg1[%c0, %c0_0] : memref<8x512xbf16, #tpu.memory_space<vmem>>, vector<8x512xbf16>
    %c0_1 = arith.constant 0 : index
    %c0_2 = arith.constant 0 : index
    %1 = vector.load %arg2[%c0_1, %c0_2] : memref<512x256xbf16, #tpu.memory_space<vmem>>, vector<512x256xbf16>
    %cst = arith.constant dense<0.000000e+00> : vector<8x256xf32>
    %2 = tpu.matmul %0, %1, %cst {dimension_numbers = #tpu.dot_dimension_numbers<[1], [0], [0], [1], [0, 0, 1, 1], [], []>} : vector<8x512xbf16>, vector<512x256xbf16>, vector<8x256xf32> -> vector<8x256xf32>
    %c0_3 = arith.constant 0 : index
    %c0_4 = arith.constant 0 : index
    %3 = vector.load %arg3[%c0_3, %c0_4] : memref<1x256xf32, #tpu.memory_space<vmem>>, vector<1x256xf32>
    %4 = vector.broadcast %3 : vector<1x256xf32> to vector<8x256xf32>
    %5 = arith.addf %2, %4 : vector<8x256xf32>
    %cst_5 = arith.constant 2.000000e-01 : f32
    %6 = vector.broadcast %cst_5 : f32 to vector<8x256xf32>
    %7 = arith.mulf %6, %5 : vector<8x256xf32>
    %8 = arith.maximumf %5, %7 : vector<8x256xf32>
    %9 = arith.truncf %8 : vector<8x256xf32> to vector<8x256xbf16>
    %c0_6 = arith.constant 0 : index
    %c0_7 = arith.constant 0 : index
    %10 = vector.load %arg4[%c0_6, %c0_7] : memref<256x128xbf16, #tpu.memory_space<vmem>>, vector<256x128xbf16>
    %cst_8 = arith.constant dense<0.000000e+00> : vector<8x128xf32>
    %11 = tpu.matmul %9, %10, %cst_8 {dimension_numbers = #tpu.dot_dimension_numbers<[1], [0], [0], [1], [0, 0, 1, 1], [], []>} : vector<8x256xbf16>, vector<256x128xbf16>, vector<8x128xf32> -> vector<8x128xf32>
    %c0_9 = arith.constant 0 : index
    %c0_10 = arith.constant 0 : index
    %12 = vector.load %arg5[%c0_9, %c0_10] : memref<1x128xf32, #tpu.memory_space<vmem>>, vector<1x128xf32>
    %13 = vector.broadcast %12 : vector<1x128xf32> to vector<8x128xf32>
    %14 = arith.addf %11, %13 : vector<8x128xf32>
    %cst_11 = arith.constant 2.000000e-01 : f32
    %15 = vector.broadcast %cst_11 : f32 to vector<8x128xf32>
    %16 = arith.mulf %15, %14 : vector<8x128xf32>
    %17 = arith.maximumf %14, %16 : vector<8x128xf32>
    %18 = arith.truncf %17 : vector<8x128xf32> to vector<8x128xbf16>
    %c0_12 = arith.constant 0 : index
    %c0_13 = arith.constant 0 : index
    %19 = vector.load %arg6[%c0_12, %c0_13] : memref<128x64xbf16, #tpu.memory_space<vmem>>, vector<128x64xbf16>
    %cst_14 = arith.constant dense<0.000000e+00> : vector<8x64xf32>
    %20 = tpu.matmul %18, %19, %cst_14 {dimension_numbers = #tpu.dot_dimension_numbers<[1], [0], [0], [1], [0, 0, 1, 1], [], []>} : vector<8x128xbf16>, vector<128x64xbf16>, vector<8x64xf32> -> vector<8x64xf32>
    %c0_15 = arith.constant 0 : index
    %c0_16 = arith.constant 0 : index
    %21 = vector.load %arg7[%c0_15, %c0_16] : memref<1x64xf32, #tpu.memory_space<vmem>>, vector<1x64xf32>
    %22 = vector.broadcast %21 : vector<1x64xf32> to vector<8x64xf32>
    %23 = arith.addf %20, %22 : vector<8x64xf32>
    %cst_17 = arith.constant 2.000000e-01 : f32
    %24 = vector.broadcast %cst_17 : f32 to vector<8x64xf32>
    %25 = arith.mulf %24, %23 : vector<8x64xf32>
    %26 = arith.maximumf %23, %25 : vector<8x64xf32>
    %27 = arith.truncf %26 : vector<8x64xf32> to vector<8x64xbf16>
    %c0_18 = arith.constant 0 : index
    %c0_19 = arith.constant 0 : index
    %28 = vector.load %arg8[%c0_18, %c0_19] : memref<64x128xbf16, #tpu.memory_space<vmem>>, vector<64x128xbf16>
    %cst_20 = arith.constant dense<0.000000e+00> : vector<8x128xf32>
    %29 = tpu.matmul %27, %28, %cst_20 {dimension_numbers = #tpu.dot_dimension_numbers<[1], [0], [0], [1], [0, 0, 1, 1], [], []>} : vector<8x64xbf16>, vector<64x128xbf16>, vector<8x128xf32> -> vector<8x128xf32>
    %c0_21 = arith.constant 0 : index
    %c0_22 = arith.constant 0 : index
    %30 = vector.load %arg9[%c0_21, %c0_22] : memref<1x128xf32, #tpu.memory_space<vmem>>, vector<1x128xf32>
    %31 = vector.broadcast %30 : vector<1x128xf32> to vector<8x128xf32>
    %32 = arith.addf %29, %31 : vector<8x128xf32>
    %c0_23 = arith.constant 0 : index
    %c0_24 = arith.constant 0 : index
    %33 = vector.load %arg10[%c0_23, %c0_24] : memref<8x128xf32, #tpu.memory_space<vmem>>, vector<8x128xf32>
    tpu.vector_store %arg10[%c0_23, %c0_24], %32 {strides = array<i32>} : memref<8x128xf32, #tpu.memory_space<vmem>>, vector<8x128xf32>,
    return
  }
  func.func @transform_0(%arg0: i32) -> (i32, i32) {
    %c0_i32 = arith.constant 0 : i32
    %c0_i32_0 = arith.constant 0 : i32
    return %arg0, %c0_i32 : i32, i32
  }
  func.func @transform_1(%arg0: i32) -> (i32, i32) {
    %c0_i32 = arith.constant 0 : i32
    %c0_i32_0 = arith.constant 0 : i32
    %c0_i32_1 = arith.constant 0 : i32
    return %c0_i32, %c0_i32_0 : i32, i32
  }
  func.func @transform_2(%arg0: i32) -> (i32, i32) {
    %c0_i32 = arith.constant 0 : i32
    %c0_i32_0 = arith.constant 0 : i32
    %c0_i32_1 = arith.constant 0 : i32
    return %c0_i32, %c0_i32_0 : i32, i32
  }
  func.func @transform_3(%arg0: i32) -> (i32, i32) {
    %c0_i32 = arith.constant 0 : i32
    %c0_i32_0 = arith.constant 0 : i32
    %c0_i32_1 = arith.constant 0 : i32
    return %c0_i32, %c0_i32_0 : i32, i32
  }
  func.func @transform_4(%arg0: i32) -> (i32, i32) {
    %c0_i32 = arith.constant 0 : i32
    %c0_i32_0 = arith.constant 0 : i32
    %c0_i32_1 = arith.constant 0 : i32
    return %c0_i32, %c0_i32_0 : i32, i32
  }
  func.func @transform_5(%arg0: i32) -> (i32, i32) {
    %c0_i32 = arith.constant 0 : i32
    %c0_i32_0 = arith.constant 0 : i32
    %c0_i32_1 = arith.constant 0 : i32
    return %c0_i32, %c0_i32_0 : i32, i32
  }
  func.func @transform_6(%arg0: i32) -> (i32, i32) {
    %c0_i32 = arith.constant 0 : i32
    %c0_i32_0 = arith.constant 0 : i32
    %c0_i32_1 = arith.constant 0 : i32
    return %c0_i32, %c0_i32_0 : i32, i32
  }
  func.func @transform_7(%arg0: i32) -> (i32, i32) {
    %c0_i32 = arith.constant 0 : i32
    %c0_i32_0 = arith.constant 0 : i32
    %c0_i32_1 = arith.constant 0 : i32
    return %c0_i32, %c0_i32_0 : i32, i32
  }
  func.func @transform_8(%arg0: i32) -> (i32, i32) {
    %c0_i32 = arith.constant 0 : i32
    %c0_i32_0 = arith.constant 0 : i32
    %c0_i32_1 = arith.constant 0 : i32
    return %c0_i32, %c0_i32_0 : i32, i32
  }
  func.func @transform_9(%arg0: i32) -> (i32, i32) {
    %c0_i32 = arith.constant 0 : i32
    %c0_i32_0 = arith.constant 0 : i32
    return %arg0, %c0_i32 : i32, i32
  }
}

</mosaic_0001>

<bundles_post_ra>
// kernel: tpu_custom_call.1
= control target key start
LH: loop header
LB: loop body
LE: loop exit
PB: predicated region body
PF: predicated region fallthrough
CT: control target
= control target key end

     0   :  { %14 = vsyncpa [#allocation3], 0  ;;  %s1584_s0 = inlined_call_operand.vmem [shape: bf16[8,512], index: 0, kind: input, shape index: {}]   ;;  %s1585_s1 = inlined_call_operand.hbm [shape: bf16[512,256], index: 1, kind: input, shape index: {}]   ;;  %s1586_s2 = inlined_call_operand.vmem [shape: f32[1,256], index: 2, kind: input, shape index: {}]   ;;  %s1587_s3 = inlined_call_operand.hbm [shape: bf16[256,128], index: 3, kind: input, shape index: {}]   ;;  %s1588_s4 = inlined_call_operand.vmem [shape: f32[1,128], index: 4, kind: input, shape index: {}]   ;;  %s1589_s5 = inlined_call_operand.vmem [shape: bf16[128,64], index: 5, kind: input, shape index: {}]   ;;  %s1590_s6 = inlined_call_operand.vmem [shape: f32[1,64], index: 6, kind: input, shape index: {}]   ;;  %s1591_s7 = inlined_call_operand.vmem [shape: bf16[64,128], index: 7, kind: input, shape index: {}]   ;;  %s1592_s8 = inlined_call_operand.vmem [shape: f32[1,128], index: 8, kind: input, shape index: {}]   ;;  %s1593_s9 = inlined_call_operand.hbm [shape: f32[8,128], index: 9, kind: output, shape index: {}]  }
   0x1   :  { %15 = vsyncpa [#allocation6], 0 }
   0x2   :  { %16 = vsyncpa [#allocation4], 0  ;;  %s23_s11 = sshll.u32 %s1585_s1, 4  ;;  %s1448_s12 = smov [#allocation2]   ;;  %s24_s11 = int_to_ptr.hbm [resolvable:$true] %s23_s11 }
   0x3   :  { %s25_s13 = sshll.u32 %s1448_s12, 4  ;;  %s38_s16 = sshll.u32 %s1587_s3, 4  ;;  %s26_s13 = int_to_ptr.vmem [resolvable:$true] %s25_s13  ;;  %s39_s16 = int_to_ptr.hbm [resolvable:$true] %s38_s16 }
   0x4   :  { %s1449_s17 = smov 128   ;;  %s1450_s18 = smov 8  }
   0x5   :  { %31 = dma.hbm_to_vmem [thread:$0]  %s24_s11, 8192, %s26_s13, [#allocation3], %s1449_s17, %s1449_s17, %s1450_s18  }
   0x6   :  { %s1451_s19 = smov [#allocation5]   ;;  %s1452_s21 = smov 64  }
   0x7   :  { %s40_s20 = sshll.u32 %s1451_s19, 4  ;;  %s1453_s22 = smov 4   ;;  %s41_s20 = int_to_ptr.vmem [resolvable:$true] %s40_s20 }
   0x8   :  { %46 = dma.hbm_to_vmem [thread:$0]  %s39_s16, 2048, %s41_s20, [#allocation6], %s1452_s21, %s1452_s21, %s1453_s22  }
   0x9   :  { %1442 = dma.done.wait [#allocation3], 8192  }
   0xa   :  { %1443 = vsyncadd [#allocation3], 4294959104 }
   0xb   :  { %1444 = dma.done.wait [#allocation6], 2048  }
   0xc   :  { %1445 = vsyncadd [#allocation6], 4294965248  ;;  %v957_v0 = vld [vmem:[#allocation2 + $0x70] sm:$0xf]  ;;  %v1283_v1 = vld [vmem:[#allocation2 + $0x74] sm:$0xf0] }
   0xd   :  { %v1021_v2 = vld [vmem:[#allocation2 + $0xf0] sm:$0xf]  ;;  %v958_v3 = vor.u32 %v1283_v1, %v957_v0  ;;  %v1299_v4 = vld [vmem:[#allocation2 + $0xf4] sm:$0xf0]  ;;  %v949_v11 = vld [vmem:[#allocation2 + $0x60] sm:$0xf] }
   0xe   :  { %v1085_v5 = vld [vmem:[#allocation2 + $0x170] sm:$0xf]  ;;  %v1315_v6 = vld [vmem:[#allocation2 + $0x174] sm:$0xf0]  ;;  %v1022_v7 = vor.u32 %v1299_v4, %v1021_v2  ;;  %v1281_v13 = vld [vmem:[#allocation2 + $0x64] sm:$0xf0] }
   0xf   :  { %v1086_v8 = vor.u32 %v1315_v6, %v1085_v5  ;;  %v1149_v9 = vld [vmem:[#allocation2 + $0x1f0] sm:$0xf]  ;;  %v1331_v10 = vld [vmem:[#allocation2 + $0x1f4] sm:$0xf0]  ;;  %472 = vmatpush.bf16.msra.mxu0 %v958_v3  ;;  %v1013_v14 = vld [vmem:[#allocation2 + $0xe0] sm:$0xf]  ;;  %v950_v16 = vor.u32 %v1281_v13, %v949_v11 }
  0x10   :  { %v1150_v12 = vor.u32 %v1331_v10, %v1149_v9  ;;  %v1297_v15 = vld [vmem:[#allocation2 + $0xe4] sm:$0xf0]  ;;  %485 = vmatpush.bf16.msra.mxu1 %v1022_v7  ;;  %v1077_v18 = vld [vmem:[#allocation2 + $0x160] sm:$0xf]  ;;  %v941_v23 = vld [vmem:[#allocation2 + $0x50] sm:$0xf] }
  0x11   :  { %498 = vmatpush.bf16.msra.mxu2 %v1086_v8  ;;  %v1014_v17 = vor.u32 %v1297_v15, %v1013_v14  ;;  %v1313_v19 = vld [vmem:[#allocation2 + $0x164] sm:$0xf0]  ;;  %v1141_v20 = vld [vmem:[#allocation2 + $0x1e0] sm:$0xf]  ;;  %v1279_v24 = vld [vmem:[#allocation2 + $0x54] sm:$0xf0] }
  0x12   :  { %511 = vmatpush.bf16.msra.mxu3 %v1150_v12  ;;  %v1078_v21 = vor.u32 %v1313_v19, %v1077_v18  ;;  %v1329_v22 = vld [vmem:[#allocation2 + $0x1e4] sm:$0xf0]  ;;  %v1005_v26 = vld [vmem:[#allocation2 + $0xd0] sm:$0xf]  ;;  %v1295_v27 = vld [vmem:[#allocation2 + $0xd4] sm:$0xf0]  ;;  %v942_v29 = vor.u32 %v1279_v24, %v941_v23 }
  0x13   :  { %v1142_v25 = vor.u32 %v1329_v22, %v1141_v20  ;;  %v1069_v28 = vld [vmem:[#allocation2 + $0x150] sm:$0xf]  ;;  %473 = vmatpush.bf16.msra.mxu0 %v950_v16  ;;  %v1311_v30 = vld [vmem:[#allocation2 + $0x154] sm:$0xf0]  ;;  %v1006_v33 = vor.u32 %v1295_v27, %v1005_v26  ;;  %v933_v35 = vld [vmem:[#allocation2 + $0x40] sm:$0xf] }
  0x14   :  { %v1133_v31 = vld [vmem:[#allocation2 + $0x1d0] sm:$0xf]  ;;  %v1327_v32 = vld [vmem:[#allocation2 + $0x1d4] sm:$0xf0]  ;;  %486 = vmatpush.bf16.msra.mxu1 %v1014_v17  ;;  %v1070_v34 = vor.u32 %v1311_v30, %v1069_v28  ;;  %v1277_v36 = vld [vmem:[#allocation2 + $0x44] sm:$0xf0] }
  0x15   :  { %499 = vmatpush.bf16.msra.mxu2 %v1078_v21  ;;  %v997_v37 = vld [vmem:[#allocation2 + $0xc0] sm:$0xf]  ;;  %v1134_v38 = vor.u32 %v1327_v32, %v1133_v31  ;;  %v1293_v39 = vld [vmem:[#allocation2 + $0xc4] sm:$0xf0]  ;;  %v934_v44 = vor.u32 %v1277_v36, %v933_v35  ;;  %v925_v47 = vld [vmem:[#allocation2 + $0x30] sm:$0xf] }
  0x16   :  { %512 = vmatpush.bf16.msra.mxu3 %v1142_v25  ;;  %v1061_v40 = vld [vmem:[#allocation2 + $0x140] sm:$0xf]  ;;  %v1309_v41 = vld [vmem:[#allocation2 + $0x144] sm:$0xf0]  ;;  %v998_v45 = vor.u32 %v1293_v39, %v997_v37  ;;  %v1275_v48 = vld [vmem:[#allocation2 + $0x34] sm:$0xf0] }
  0x17   :  { %v1125_v42 = vld [vmem:[#allocation2 + $0x1c0] sm:$0xf]  ;;  %v1325_v43 = vld [vmem:[#allocation2 + $0x1c4] sm:$0xf0]  ;;  %474 = vmatpush.bf16.msra.mxu0 %v942_v29  ;;  %v1062_v46 = vor.u32 %v1309_v41, %v1061_v40  ;;  %v989_v49 = vld [vmem:[#allocation2 + $0xb0] sm:$0xf]  ;;  %v926_v56 = vor.u32 %v1275_v48, %v925_v47 }
  0x18   :  { %487 = vmatpush.bf16.msra.mxu1 %v1006_v33  ;;  %v1126_v50 = vor.u32 %v1325_v43, %v1125_v42  ;;  %v1291_v51 = vld [vmem:[#allocation2 + $0xb4] sm:$0xf0]  ;;  %v1053_v52 = vld [vmem:[#allocation2 + $0x130] sm:$0xf]  ;;  %v917_v59 = vld [vmem:[#allocation2 + $0x20] sm:$0xf] }
  0x19   :  { %500 = vmatpush.bf16.msra.mxu2 %v1070_v34  ;;  %v1307_v53 = vld [vmem:[#allocation2 + $0x134] sm:$0xf0]  ;;  %v1117_v54 = vld [vmem:[#allocation2 + $0x1b0] sm:$0xf]  ;;  %v990_v57 = vor.u32 %v1291_v51, %v989_v49  ;;  %v1273_v60 = vld [vmem:[#allocation2 + $0x24] sm:$0xf0] }
  0x1a   :  { %513 = vmatpush.bf16.msra.mxu3 %v1134_v38  ;;  %v1323_v55 = vld [vmem:[#allocation2 + $0x1b4] sm:$0xf0]  ;;  %v1054_v58 = vor.u32 %v1307_v53, %v1053_v52  ;;  %v981_v61 = vld [vmem:[#allocation2 + $0xa0] sm:$0xf]  ;;  %v1289_v63 = vld [vmem:[#allocation2 + $0xa4] sm:$0xf0]  ;;  %v918_v4 = vor.u32 %v1273_v60, %v917_v59 }
  0x1b   :  { %475 = vmatpush.bf16.msra.mxu0 %v934_v44  ;;  %v1118_v62 = vor.u32 %v1323_v55, %v1117_v54  ;;  %v1045_v0 = vld [vmem:[#allocation2 + $0x120] sm:$0xf]  ;;  %v1305_v1 = vld [vmem:[#allocation2 + $0x124] sm:$0xf0]  ;;  %v982_v5 = vor.u32 %v1289_v63, %v981_v61  ;;  %v909_v7 = vld [vmem:[#allocation2 + $0x10] sm:$0xf] }
  0x1c   :  { %488 = vmatpush.bf16.msra.mxu1 %v998_v45  ;;  %v1109_v2 = vld [vmem:[#allocation2 + $0x1a0] sm:$0xf]  ;;  %v1321_v3 = vld [vmem:[#allocation2 + $0x1a4] sm:$0xf0]  ;;  %v1046_v6 = vor.u32 %v1305_v1, %v1045_v0  ;;  %v1271_v8 = vld [vmem:[#allocation2 + $0x14] sm:$0xf0] }
  0x1d   :  { %501 = vmatpush.bf16.msra.mxu2 %v1062_v46  ;;  %v973_v9 = vld [vmem:[#allocation2 + $0x90] sm:$0xf]  ;;  %v1110_v10 = vor.u32 %v1321_v3, %v1109_v2  ;;  %v1287_v11 = vld [vmem:[#allocation2 + $0x94] sm:$0xf0]  ;;  %v901_v16 = vld [vmem:[#allocation2] sm:$0xf]  ;;  %v910_v17 = vor.u32 %v1271_v8, %v909_v7 }
  0x1e   :  { %514 = vmatpush.bf16.msra.mxu3 %v1126_v50  ;;  %v1037_v12 = vld [vmem:[#allocation2 + $0x110] sm:$0xf]  ;;  %v1303_v13 = vld [vmem:[#allocation2 + $0x114] sm:$0xf0]  ;;  %v1269_v18 = vld [vmem:[#allocation2 + $0x4] sm:$0xf0]  ;;  %v974_v21 = vor.u32 %v1287_v11, %v973_v9 }
  0x1f   :  { %476 = vmatpush.bf16.msra.mxu0 %v926_v56  ;;  %v1101_v14 = vld [vmem:[#allocation2 + $0x190] sm:$0xf]  ;;  %v1319_v15 = vld [vmem:[#allocation2 + $0x194] sm:$0xf0]  ;;  %v965_v19 = vld [vmem:[#allocation2 + $0x80] sm:$0xf]  ;;  %v1038_v22 = vor.u32 %v1303_v13, %v1037_v12  ;;  %v902_v33 = vor.u32 %v1269_v18, %v901_v16 }
  0x20   :  { %489 = vmatpush.bf16.msra.mxu1 %v990_v57  ;;  %v1285_v20 = vld [vmem:[#allocation2 + $0x84] sm:$0xf0]  ;;  %v1029_v23 = vld [vmem:[#allocation2 + $0x100] sm:$0xf]  ;;  %v1102_v26 = vor.u32 %v1319_v15, %v1101_v14  ;;  %v1282_v28 = vld [vmem:[#allocation2 + $0x74] sm:$0xf] }
  0x21   :  { %502 = vmatpush.bf16.msra.mxu2 %v1054_v58  ;;  %v1301_v24 = vld [vmem:[#allocation2 + $0x104] sm:$0xf0]  ;;  %v1093_v25 = vld [vmem:[#allocation2 + $0x180] sm:$0xf]  ;;  %v959_v29 = vld [vmem:[#allocation2 + $0x78] sm:$0xf0]  ;;  %v966_v38 = vor.u32 %v1285_v20, %v965_v19 }
  0x22   :  { %515 = vmatpush.bf16.msra.mxu3 %v1118_v62  ;;  %v1317_v27 = vld [vmem:[#allocation2 + $0x184] sm:$0xf0]  ;;  %v1298_v30 = vld [vmem:[#allocation2 + $0xf4] sm:$0xf]  ;;  %v1023_v31 = vld [vmem:[#allocation2 + $0xf8] sm:$0xf0]  ;;  %v1030_v39 = vor.u32 %v1301_v24, %v1029_v23  ;;  %v962_v45 = vor.u32 %v1282_v28, %v959_v29 }
  0x23   :  { %477 = vmatpush.bf16.msra.mxu0 %v918_v4  ;;  %v67_v32 = vld [vmem:[%s1584_s0 + $0x8] sm:$0xff]  ;;  %v1314_v34 = vld [vmem:[#allocation2 + $0x174] sm:$0xf]  ;;  %v1087_v35 = vld [vmem:[#allocation2 + $0x178] sm:$0xf0]  ;;  %v1094_v44 = vor.u32 %v1317_v27, %v1093_v25  ;;  %v1026_v47 = vor.u32 %v1298_v30, %v1023_v31  ;;  %vm863_vm0 = vcmask 523264  }
  0x24   :  { %490 = vmatpush.bf16.msra.mxu1 %v982_v5  ;;  %v142_v36 = vunpack.c.l.b16 %v67_v32  ;;  %v66_v37 = vld [vmem:[%s1584_s0] sm:$0xff]  ;;  %v1330_v40 = vld [vmem:[#allocation2 + $0x1f4] sm:$0xf]  ;;  %v1151_v41 = vld [vmem:[#allocation2 + $0x1f8] sm:$0xf0]  ;;  %v143_v43 = vunpack.c.h.b16 %v67_v32  ;;  %v1090_v48 = vor.u32 %v1314_v34, %v1087_v35  ;;  %s1454_s28 = smov [#allocation7]  }
  0x25   :  { %503 = vmatpush.bf16.msra.mxu2 %v1046_v6  ;;  %v140_v42 = vunpack.c.l.b16 %v66_v37  ;;  %v141_v46 = vunpack.c.h.b16 %v66_v37  ;;  %v1280_v49 = vld [vmem:[#allocation2 + $0x64] sm:$0xf]  ;;  %v951_v50 = vld [vmem:[#allocation2 + $0x68] sm:$0xf0]  ;;  %v1154_v52 = vor.u32 %v1330_v40, %v1151_v41  ;;  %v1278_v1 = vld [vmem:[#allocation2 + $0x54] sm:$0xf] }
  0x26   :  { %516 = vmatpush.bf16.msra.mxu3 %v1110_v10  ;;  %v1296_v51 = vld [vmem:[#allocation2 + $0xe4] sm:$0xf]  ;;  %v1015_v53 = vld [vmem:[#allocation2 + $0xe8] sm:$0xf0]  ;;  %v1517_v56 = vpack.c.b16 %v142_v36, %v142_v36  ;;  %v1521_v60 = vpack.c.b16 %v143_v43, %v143_v43  ;;  %v954_v61 = vor.u32 %v1280_v49, %v951_v50  ;;  %v943_v2 = vld [vmem:[#allocation2 + $0x58] sm:$0xf0] }
  0x27   :  { %478 = vmatpush.bf16.msra.mxu0 %v910_v17  ;;  %v1312_v54 = vld [vmem:[#allocation2 + $0x164] sm:$0xf]  ;;  %v1079_v55 = vld [vmem:[#allocation2 + $0x168] sm:$0xf0]  ;;  %v1519_v59 = vpack.c.b16 %v140_v42, %v140_v42  ;;  %v1523_v62 = vpack.c.b16 %v141_v46, %v141_v46  ;;  %v1018_v63 = vor.u32 %v1296_v51, %v1015_v53  ;;  %v1294_v3 = vld [vmem:[#allocation2 + $0xd4] sm:$0xf]  ;;  %v946_v10 = vor.u32 %v1278_v1, %v943_v2 }
  0x28   :  { %491 = vmatpush.bf16.msra.mxu1 %v974_v21  ;;  %v1328_v57 = vld [vmem:[#allocation2 + $0x1e4] sm:$0xf]  ;;  %v1143_v58 = vld [vmem:[#allocation2 + $0x1e8] sm:$0xf0]  ;;  %v1082_v0 = vor.u32 %v1312_v54, %v1079_v55  ;;  %v1007_v5 = vld [vmem:[#allocation2 + $0xd8] sm:$0xf0] }
  0x29   :  { %504 = vmatpush.bf16.msra.mxu2 %v1038_v22  ;;  %v1146_v4 = vor.u32 %v1328_v57, %v1143_v58  ;;  %v1310_v6 = vld [vmem:[#allocation2 + $0x154] sm:$0xf]  ;;  %v1071_v7 = vld [vmem:[#allocation2 + $0x158] sm:$0xf0]  ;;  %v1010_v11 = vor.u32 %v1294_v3, %v1007_v5  ;;  %v1276_v13 = vld [vmem:[#allocation2 + $0x44] sm:$0xf] }
  0x2a   :  { %517 = vmatpush.bf16.msra.mxu3 %v1102_v26  ;;  %v1326_v8 = vld [vmem:[#allocation2 + $0x1d4] sm:$0xf]  ;;  %v1135_v9 = vld [vmem:[#allocation2 + $0x1d8] sm:$0xf0]  ;;  %v1074_v12 = vor.u32 %v1310_v6, %v1071_v7  ;;  %v935_v14 = vld [vmem:[#allocation2 + $0x48] sm:$0xf0] }
  0x2b   :  { %479 = vmatpush.bf16.msra.mxu0 %v902_v33  ;;  %v1292_v15 = vld [vmem:[#allocation2 + $0xc4] sm:$0xf]  ;;  %v1138_v16 = vor.u32 %v1326_v8, %v1135_v9  ;;  %v999_v17 = vld [vmem:[#allocation2 + $0xc8] sm:$0xf0]  ;;  %v938_v22 = vor.u32 %v1276_v13, %v935_v14  ;;  %v1274_v25 = vld [vmem:[#allocation2 + $0x34] sm:$0xf] }
  0x2c   :  { %492 = vmatpush.bf16.msra.mxu1 %v966_v38  ;;  %v1308_v18 = vld [vmem:[#allocation2 + $0x144] sm:$0xf]  ;;  %v1063_v19 = vld [vmem:[#allocation2 + $0x148] sm:$0xf0]  ;;  %v1002_v23 = vor.u32 %v1292_v15, %v999_v17  ;;  %v927_v26 = vld [vmem:[#allocation2 + $0x38] sm:$0xf0] }
  0x2d   :  { %505 = vmatpush.bf16.msra.mxu2 %v1030_v39  ;;  %v1324_v20 = vld [vmem:[#allocation2 + $0x1c4] sm:$0xf]  ;;  %v1127_v21 = vld [vmem:[#allocation2 + $0x1c8] sm:$0xf0]  ;;  %v1066_v24 = vor.u32 %v1308_v18, %v1063_v19  ;;  %v1290_v27 = vld [vmem:[#allocation2 + $0xb4] sm:$0xf]  ;;  %v930_v34 = vor.u32 %v1274_v25, %v927_v26 }
  0x2e   :  { %518 = vmatpush.bf16.msra.mxu3 %v1094_v44  ;;  %480 = vmatmul.bf16.vlgmr.msra.gmra.mxu0 %v1519_v59  ;;  %v1130_v28 = vor.u32 %v1324_v20, %v1127_v21  ;;  %v991_v29 = vld [vmem:[#allocation2 + $0xb8] sm:$0xf0]  ;;  %v1306_v30 = vld [vmem:[#allocation2 + $0x134] sm:$0xf]  ;;  %v1272_v35 = vld [vmem:[#allocation2 + $0x24] sm:$0xf] }
  0x2f   :  { %524 = vmatpush.bf16.msrb.mxu0 %v962_v45  ;;  %493 = vmatmul.bf16.vlgmr.msra.gmra.mxu1 %v1523_v62  ;;  %v1055_v31 = vld [vmem:[#allocation2 + $0x138] sm:$0xf0]  ;;  %v1322_v32 = vld [vmem:[#allocation2 + $0x1b4] sm:$0xf]  ;;  %v994_v36 = vor.u32 %v1290_v27, %v991_v29  ;;  %v919_v38 = vld [vmem:[#allocation2 + $0x28] sm:$0xf0] }
  0x30   :  { %537 = vmatpush.bf16.msrb.mxu1 %v1026_v47  ;;  %506 = vmatmul.bf16.vlgmr.msra.gmra.mxu2 %v1517_v56  ;;  %v1119_v33 = vld [vmem:[#allocation2 + $0x1b8] sm:$0xf0]  ;;  %v1058_v37 = vor.u32 %v1306_v30, %v1055_v31  ;;  %v1288_v39 = vld [vmem:[#allocation2 + $0xa4] sm:$0xf]  ;;  %v983_v41 = vld [vmem:[#allocation2 + $0xa8] sm:$0xf0]  ;;  %v922_v46 = vor.u32 %v1272_v35, %v919_v38 }
  0x31   :  { %550 = vmatpush.bf16.msrb.mxu2 %v1090_v48  ;;  %519 = vmatmul.bf16.vlgmr.msra.gmra.mxu3 %v1521_v60  ;;  %v1122_v40 = vor.u32 %v1322_v32, %v1119_v33  ;;  %v1304_v42 = vld [vmem:[#allocation2 + $0x124] sm:$0xf]  ;;  %v1047_v43 = vld [vmem:[#allocation2 + $0x128] sm:$0xf0]  ;;  %v986_v47 = vor.u32 %v1288_v39, %v983_v41  ;;  %v1270_v49 = vld [vmem:[#allocation2 + $0x14] sm:$0xf] }
  0x32   :  { %563 = vmatpush.bf16.msrb.mxu3 %v1154_v52  ;;  %v1320_v44 = vld [vmem:[#allocation2 + $0x1a4] sm:$0xf]  ;;  %v1111_v45 = vld [vmem:[#allocation2 + $0x1a8] sm:$0xf0]  ;;  %v1050_v48 = vor.u32 %v1304_v42, %v1047_v43  ;;  %v911_v50 = vld [vmem:[#allocation2 + $0x18] sm:$0xf0] }
  0x33   :  { %525 = vmatpush.bf16.msrb.mxu0 %v954_v61  ;;  %v1286_v51 = vld [vmem:[#allocation2 + $0x94] sm:$0xf]  ;;  %v1114_v52 = vor.u32 %v1320_v44, %v1111_v45  ;;  %v975_v53 = vld [vmem:[#allocation2 + $0x98] sm:$0xf0]  ;;  %v914_v61 = vor.u32 %v1270_v49, %v911_v50  ;;  %v1268_v1 = vld [vmem:[#allocation2 + $0x4] sm:$0xf] }
  0x34   :  { %538 = vmatpush.bf16.msrb.mxu1 %v1018_v63  ;;  %v1302_v54 = vld [vmem:[#allocation2 + $0x114] sm:$0xf]  ;;  %v1039_v55 = vld [vmem:[#allocation2 + $0x118] sm:$0xf0]  ;;  %v978_v63 = vor.u32 %v1286_v51, %v975_v53  ;;  %v903_v2 = vld [vmem:[#allocation2 + $0x8] sm:$0xf0] }
  0x35   :  { %551 = vmatpush.bf16.msrb.mxu2 %v1082_v0  ;;  %v1318_v57 = vld [vmem:[#allocation2 + $0x194] sm:$0xf]  ;;  %v1103_v58 = vld [vmem:[#allocation2 + $0x198] sm:$0xf0]  ;;  %v1042_v0 = vor.u32 %v1302_v54, %v1039_v55  ;;  %v1284_v3 = vld [vmem:[#allocation2 + $0x84] sm:$0xf] }
  0x36   :  { %564 = vmatpush.bf16.msrb.mxu3 %v1146_v4  ;;  %v1106_v4 = vor.u32 %v1318_v57, %v1103_v58  ;;  %v967_v5 = vld [vmem:[#allocation2 + $0x88] sm:$0xf0]  ;;  %v1300_v6 = vld [vmem:[#allocation2 + $0x104] sm:$0xf]  ;;  %v1339_v14 = vld [vmem:[#allocation5 + $0x38] sm:$0xff]  ;;  %s886_s29 = sshll.u32 %s1454_s28, 4  ;;  %s887_s29 = int_to_ptr.vmem [resolvable:$true] %s886_s29 }
  0x37   :  { %526 = vmatpush.bf16.msrb.mxu0 %v946_v10  ;;  %v1031_v7 = vld [vmem:[#allocation2 + $0x108] sm:$0xf0]  ;;  %v1316_v8 = vld [vmem:[#allocation2 + $0x184] sm:$0xf]  ;;  %v906_v10 = vor.u32 %v1268_v1, %v903_v2  ;;  %v1338_v15 = vld [vmem:[#allocation5 + $0x30] sm:$0xff]  ;;  %s888_s10 = sshll.u32 %s1593_s9, 4  ;;  %s889_s10 = int_to_ptr.hbm [resolvable:$true] %s888_s10 }
  0x38   :  { %539 = vmatpush.bf16.msrb.mxu1 %v1010_v11  ;;  %v1095_v9 = vld [vmem:[#allocation2 + $0x188] sm:$0xf0]  ;;  %v970_v11 = vor.u32 %v1284_v3, %v967_v5  ;;  %v1336_v17 = vld [vmem:[#allocation5 + $0x20] sm:$0xff]  ;;  %v1335_v18 = vld [vmem:[#allocation5 + $0x18] sm:$0xff] }
  0x39   :  { %552 = vmatpush.bf16.msrb.mxu2 %v1074_v12  ;;  %v1034_v12 = vor.u32 %v1300_v6, %v1031_v7  ;;  %v1098_v13 = vor.u32 %v1316_v8, %v1095_v9  ;;  %v1334_v19 = vld [vmem:[#allocation5 + $0x10] sm:$0xff]  ;;  %v1333_v20 = vld [vmem:[#allocation5 + $0x8] sm:$0xff]  ;;  %v1347_v21 = vld [vmem:[#allocation5 + $0x78] sm:$0xff] }
  0x3a   :  { %565 = vmatpush.bf16.msrb.mxu3 %v1138_v16  ;;  %v1337_v16 = vld [vmem:[#allocation5 + $0x28] sm:$0xff]  ;;  %v1340_v38 = vld [vmem:[#allocation5 + $0x40] sm:$0xff]  ;;  %v1351_v3 = vld [vmem:[%s1589_s5 + $0x18] sm:$0xff] }
  0x3b   :  { %527 = vmatpush.bf16.msrb.mxu0 %v938_v22  ;;  %v1332_v22 = vld [vmem:[#allocation5] sm:$0xff]  ;;  %v1341_v33 = vld [vmem:[#allocation5 + $0x48] sm:$0xff]  ;;  %v1359_v8 = vld [vmem:[%s1591_s7 + $0x18] sm:$0xff] }
  0x3c   :  { %540 = vmatpush.bf16.msrb.mxu1 %v1002_v23  ;;  %v1353_v1 = vld [vmem:[%s1589_s5 + $0x28] sm:$0xff]  ;;  %v1352_v2 = vld [vmem:[%s1589_s5 + $0x20] sm:$0xff] }
  0x3d   :  { %553 = vmatpush.bf16.msrb.mxu2 %v1066_v24  ;;  %v1343_v24 = vld [vmem:[#allocation5 + $0x58] sm:$0xff]  ;;  %v1349_v5 = vld [vmem:[%s1589_s5 + $0x8] sm:$0xff]  ;;  %v1348_v7 = vld [vmem:[%s1589_s5] sm:$0xff] }
  0x3e   :  { %566 = vmatpush.bf16.msrb.mxu3 %v1130_v28  ;;  %v1342_v28 = vld [vmem:[#allocation5 + $0x50] sm:$0xff] }
  0x3f   :  { %528 = vmatpush.bf16.msrb.mxu0 %v930_v34 }
  0x40   :  { %541 = vmatpush.bf16.msrb.mxu1 %v994_v36 }
  0x41   :  { %554 = vmatpush.bf16.msrb.mxu2 %v1058_v37 }
  0x42   :  { %567 = vmatpush.bf16.msrb.mxu3 %v1122_v40 }
  0x43   :  { %529 = vmatpush.bf16.msrb.mxu0 %v922_v46 }
  0x44   :  { %542 = vmatpush.bf16.msrb.mxu1 %v986_v47 }
  0x45   :  { %555 = vmatpush.bf16.msrb.mxu2 %v1050_v48 }
  0x46   :  { %568 = vmatpush.bf16.msrb.mxu3 %v1114_v52 }
  0x47   :  { %530 = vmatpush.bf16.msrb.mxu0 %v914_v61 }
  0x48   :  { %543 = vmatpush.bf16.msrb.mxu1 %v978_v63  ;;  %v1355_v63 = vld [vmem:[%s1589_s5 + $0x38] sm:$0xff] }
  0x49   :  { %556 = vmatpush.bf16.msrb.mxu2 %v1042_v0  ;;  %v1354_v0 = vld [vmem:[%s1589_s5 + $0x30] sm:$0xff] }
  0x4a   :  { %569 = vmatpush.bf16.msrb.mxu3 %v1106_v4  ;;  %v1350_v4 = vld [vmem:[%s1589_s5 + $0x10] sm:$0xff] }
  0x4b   :  { %531 = vmatpush.bf16.msrb.mxu0 %v906_v10  ;;  %v1358_v10 = vld [vmem:[%s1591_s7 + $0x10] sm:$0xff] }
  0x4c   :  { %544 = vmatpush.bf16.msrb.mxu1 %v970_v11  ;;  %v1367_v11 = vld [vmem:[%s1588_s4] ss:$0 sm:$0xff] }
  0x4d   :  { %557 = vmatpush.bf16.msrb.mxu2 %v1034_v12 }
  0x4e   :  { %570 = vmatpush.bf16.msrb.mxu3 %v1098_v13  ;;  %532 = vmatmul.bf16.vlgmr.msrb.gmra.mxu0 %v1519_v59  ;;  %v1346_v59 = vld [vmem:[#allocation5 + $0x70] sm:$0xff] }
  0x4f   :  { %714 = vmatpush.bf16.msra.mxu0 %v1339_v14  ;;  %545 = vmatmul.bf16.vlgmr.msrb.gmra.mxu1 %v1523_v62  ;;  %v132_v62 = vld [vmem:[%s1586_s2] sm:$0x3] }
  0x50   :  { %558 = vmatmul.bf16.vlgmr.msrb.gmra.mxu2 %v1517_v56  ;;  %727 = vmatpush.bf16.msra.mxu1 %v1347_v21  ;;  %v1345_v56 = vld [vmem:[#allocation5 + $0x68] sm:$0xff]  ;;  %v134_v23 = vperm.slane %v132_v62, 0  ;;  %v135_v43 = vperm.slane %v132_v62, 1  ;;  %v1368_v21 = vld [vmem:[%s1590_s6] ss:$0 sm:$0xff] }
  0x51   :  { %571 = vmatmul.bf16.vlgmr.msrb.gmra.mxu3 %v1521_v60  ;;  %v1344_v60 = vld [vmem:[#allocation5 + $0x60] sm:$0xff]  ;;  %811 = vmatpush.bf16.msra.mxu2 %v1355_v63 }
  0x52   :  { %871 = vmatpush.bf16.msra.mxu3 %v1359_v8 }
  0x53   :  { %715 = vmatpush.bf16.msra.mxu0 %v1338_v15 }
  0x54   :  { %728 = vmatpush.bf16.msra.mxu1 %v1346_v59 }
  0x55   :  { %812 = vmatpush.bf16.msra.mxu2 %v1354_v0 }
  0x56   :  { %872 = vmatpush.bf16.msra.mxu3 %v1358_v10 }
  0x57   :  { %716 = vmatpush.bf16.msra.mxu0 %v1337_v16 }
  0x58   :  { %729 = vmatpush.bf16.msra.mxu1 %v1345_v56 }
  0x59   :  { %813 = vmatpush.bf16.msra.mxu2 %v1353_v1 }
  0x5b   :  { %717 = vmatpush.bf16.msra.mxu0 %v1336_v17 }
  0x5c   :  { %730 = vmatpush.bf16.msra.mxu1 %v1344_v60 }
  0x5d   :  { %814 = vmatpush.bf16.msra.mxu2 %v1352_v2 }
  0x5f   :  { %718 = vmatpush.bf16.msra.mxu0 %v1335_v18 }
  0x60   :  { %731 = vmatpush.bf16.msra.mxu1 %v1343_v24  ;;  %v1369_v24 = vld [vmem:[%s1592_s8] ss:$0 sm:$0xff] }
  0x61   :  { %815 = vmatpush.bf16.msra.mxu2 %v1351_v3 }
  0x63   :  { %719 = vmatpush.bf16.msra.mxu0 %v1334_v19  ;;  %v1357_v19 = vld [vmem:[%s1591_s7 + $0x8] sm:$0xff] }
  0x64   :  { %732 = vmatpush.bf16.msra.mxu1 %v1342_v28  ;;  %873 = vmatpush.bf16.msra.mxu3 %v1357_v19 }
  0x65   :  { %816 = vmatpush.bf16.msra.mxu2 %v1350_v4 }
  0x67   :  { %720 = vmatpush.bf16.msra.mxu0 %v1333_v20  ;;  %v1356_v20 = vld [vmem:[%s1591_s7] sm:$0xff] }
  0x68   :  { %733 = vmatpush.bf16.msra.mxu1 %v1341_v33  ;;  %874 = vmatpush.bf16.msra.mxu3 %v1356_v20 }
  0x69   :  { %817 = vmatpush.bf16.msra.mxu2 %v1349_v5 }
  0x6b   :  { %721 = vmatpush.bf16.msra.mxu0 %v1332_v22 }
  0x6c   :  { %734 = vmatpush.bf16.msra.mxu1 %v1340_v38 }
  0x6d   :  { %818 = vmatpush.bf16.msra.mxu2 %v1348_v7 }
  0xab   :  { %v481_v25 = vpop.f32.mrf.mxu0 }
  0xac   :  { %v482_v26 = vadd.f32 %v481_v25, %v134_v23  ;;  %v494_v27 = vpop.f32.mrf.mxu1 }
  0xae   :  { %v495_v29 = vadd.f32 %v494_v27, %v482_v26 }
  0xb3   :  { %v507_v30 = vpop.f32.mrf.mxu2  ;;  %v483_v35 = vpop.f32.mrf.mxu0 }
  0xb4   :  { %v508_v31 = vadd.f32 %v507_v30, %v495_v29  ;;  %v520_v32 = vpop.f32.mrf.mxu3  ;;  %v496_v36 = vpop.f32.mrf.mxu1 }
  0xb6   :  { %v521_v34 = vadd.f32 %v520_v32, %v508_v31 }
  0xb8   :  { %v576_v37 = vmul.f32 0.2, %v521_v34 }
  0xba   :  { %v578_v39 = vmax.f32 %v521_v34, %v576_v37 }
  0xbb   :  { %v509_v40 = vpop.f32.mrf.mxu2 }
  0xbc   :  { %v580_v41 = vpack.c.bf16 %v578_v39, %v578_v39  ;;  %v522_v42 = vpop.f32.mrf.mxu3 }
  0xbe   :  { %722 = vmatmul.bf16.vlgmr.msra.gmra.mxu0 %v580_v41 }
  0xcb   :  { %v533_v44 = vpop.f32.mrf.mxu0 }
  0xcc   :  { %v534_v45 = vadd.f32 %v533_v44, %v135_v43  ;;  %v546_v46 = vpop.f32.mrf.mxu1 }
  0xce   :  { %v547_v47 = vadd.f32 %v546_v46, %v534_v45 }
  0xd3   :  { %v559_v48 = vpop.f32.mrf.mxu2  ;;  %v535_v51 = vpop.f32.mrf.mxu0 }
  0xd4   :  { %v560_v49 = vadd.f32 %v559_v48, %v547_v47  ;;  %v572_v50 = vpop.f32.mrf.mxu3  ;;  %v548_v52 = vpop.f32.mrf.mxu1 }
  0xd6   :  { %v573_v53 = vadd.f32 %v572_v50, %v560_v49 }
  0xd8   :  { %v577_v54 = vmul.f32 0.2, %v573_v53 }
  0xda   :  { %v579_v55 = vmax.f32 %v573_v53, %v577_v54 }
  0xdb   :  { %v561_v57 = vpop.f32.mrf.mxu2 }
  0xdc   :  { %v581_v58 = vpack.c.bf16 %v579_v55, %v579_v55  ;;  %v574_v61 = vpop.f32.mrf.mxu3 }
  0xde   :  { %735 = vmatmul.bf16.vlgmr.msra.gmra.mxu1 %v581_v58 }
 0x13b   :  { %v723_v6 = vpop.f32.mrf.mxu0 }
 0x13c   :  { %v724_v12 = vadd.f32 %v1367_v11, %v723_v6 }
 0x143   :  { %v725_v9 = vpop.f32.mrf.mxu0 }
 0x15b   :  { %v736_v13 = vpop.f32.mrf.mxu1 }
 0x15c   :  { %v737_v14 = vadd.f32 %v736_v13, %v724_v12 }
 0x15e   :  { %v740_v15 = vmul.f32 0.2, %v737_v14 }
 0x160   :  { %v741_v16 = vmax.f32 %v737_v14, %v740_v15 }
 0x162   :  { %v742_v17 = vpack.c.bf16 %v741_v16, %v741_v16 }
 0x163   :  { %v738_v18 = vpop.f32.mrf.mxu1 }
 0x164   :  { %819 = vmatmul.bf16.vlgmr.msra.gmra.mxu2 %v742_v17 }
 0x1e7   :  { %v820_v22 = vpop.f32.mrf.mxu2 }
 0x1e8   :  { %v821_v59 = vadd.f32 %v1368_v21, %v820_v22 }
 0x1ea   :  { %v824_v56 = vmul.f32 0.2, %v821_v59 }
 0x1ec   :  { %v825_v60 = vmax.f32 %v821_v59, %v824_v56 }
 0x1ee   :  { %v826_v62 = vpack.c.bf16 %v825_v60, %v825_v60 }
 0x1ef   :  { %v822_v23 = vpop.f32.mrf.mxu2 }
 0x1f0   :  { %1267 = vmatmul.msk.bf16.vlgmr.msra.gmra.mxu3 %vm863_vm0, %v826_v62 }
 0x273   :  { %v876_v25 = vpop.f32.mrf.mxu3 }
 0x274   :  { %v877_v26 = vadd.f32 %v1369_v24, %v876_v25 }
 0x276   :  { %880 = vst [vmem:[#allocation7] sm:$0xff] %v877_v26 }
 0x277   :  { %891 = dma.vmem_to_hbm [thread:$0]  %s887_s29, 128, %s889_s10, [#allocation4]  }
 0x27b   :  { %v878_v27 = vpop.f32.mrf.mxu3 }
 0x27c   :  { %1446 = dma.done.wait [#allocation4], 128  }
 0x27d   :  { %1447 = vsyncadd [#allocation4], 4294967168 }
 0x27e   :  { %896 = vsyncpa [#allocation3], 1 }
 0x27f   :  { %897 = vsyncpa [#allocation6], 1 }
 0x280   :  { %898 = vsyncpa [#allocation4], 1 }

</bundles_post_ra>
